<compile_context>
chip_gen: v6e
topology: v6e:2x2x1
jax: 0.10.0
libtpu: 0.0.40
codegen_flags: <defaults>
</compile_context>

<pallas_src>
import functools

import jax
import jax.numpy as jnp
from jax.experimental import pallas as pl
from jax.experimental.pallas import tpu as pltpu

EPS = 1e-5
LANES = 128


def _round_up(a, b):
    return (a + b - 1) // b * b


# ---------------- Pass 1: conv matmul + per-tile partial BN stats -------------------------
def conv_stats_kernel(pT_ref, wT_ref,            # inputs
                      y_ref, psum_ref, psq_ref,  # outputs
                      *, groups):
    # (Cp, K) @ (K, TM) -> (Cp, TM) f32 on the MXU; M on lanes => lane-dense stores.
    y = jnp.dot(wT_ref[...], pT_ref[...], preferred_element_type=jnp.float32)
    y_ref[...] = y.astype(y_ref.dtype)           # bf16 staging buffer (read once by pass 2)

    # Lane-width-128 partial sum / sum-of-squares from the f32 matmul result.
    # Plain VPU adds per tile; the single cross-lane reduction is done once in the wrapper.
    cp = y.shape[0]
    s = jnp.zeros((cp, LANES), jnp.float32)
    q = jnp.zeros((cp, LANES), jnp.float32)
    for g in range(groups):                      # static unroll: tm // 128 chunks
        blk = y[:, g * LANES:(g + 1) * LANES]
        s = s + blk
        q = q + blk * blk
    psum_ref[...] = s
    psq_ref[...] = q


# ---------------- Pass 2: normalize + ReLU ------------------------------------------------
def bn_relu_kernel(y_ref, scale_ref, shift_ref, o_ref):
    y = y_ref[...].astype(jnp.float32)           # upcast bf16 staging -> f32
    o_ref[...] = jnp.maximum(
        y * scale_ref[...] + shift_ref[...], 0.0).astype(o_ref.dtype)


def im2col_T(x, kh, kw, stride, pad):
    # x: (N, Cin, H, W) -> patches^T of shape (K, M), K=(Cin,kh,kw) kw-fastest (matches
    # weight.reshape(Cout, Cin*kh*kw)), M=(N,Ho,Wo).  Keeps x's dtype (call with bf16!).
    n, cin, h, w = x.shape
    ho = (h + 2 * pad - kh) // stride + 1
    wo = (w + 2 * pad - kw) // stride + 1
    xp = jnp.pad(x, ((0, 0), (0, 0), (pad, pad), (pad, pad)))
    cols = []
    for i in range(kh):
        for j in range(kw):
            cols.append(xp[:, :, i:i + stride * ho:stride, j:j + stride * wo:stride])
    p = jnp.stack(cols, axis=2)                   # (N, Cin, kh*kw, Ho, Wo)
    p = p.transpose(1, 2, 0, 3, 4)                # (Cin, kh*kw, N, Ho, Wo)
    return p.reshape(cin * kh * kw, n * ho * wo), ho, wo


def conv_block(x, weight, bias, gamma, beta, *,
               kernel_size=4, stride=2, padding=1, tile_m=2048):
    # x: (N, Cin, H, W) NCHW;  weight: (Cout, Cin, kh, kw)  [PyTorch conventions]
    n, cin, h, w = x.shape
    cout = weight.shape[0]
    kh = kw = kernel_size

    # bf16 BEFORE im2col: all patch intermediates are 2 B/elt in HBM.
    pT, ho, wo = im2col_T(x.astype(jnp.bfloat16), kh, kw, stride, padding)   # (K, M) bf16
    k, m = pT.shape

    cp = _round_up(cout, 16)                     # sublane-aligned for bf16 packing
    tm = min(tile_m, _round_up(m, LANES))        # lane-dense M tile
    mp = _round_up(m, tm)
    nt = mp // tm
    groups = tm // LANES

    # Zero-padded M columns produce y == 0 exactly, so they do not perturb the BN sums
    # (we divide by the real M).  Padded channels have zero weights -> zero output.
    pT_b = jnp.pad(pT, ((0, 0), (0, mp - m)))
    w_mat = weight.reshape(cout, cin * kh * kw)
    wT_b = jnp.pad(w_mat, ((0, cp - cout), (0, 0))).astype(jnp.bfloat16)
    del bias  # cancels exactly under training-mode BatchNorm

    y, psum, psq = pl.pallas_call(
        functools.partial(conv_stats_kernel, groups=groups),
        out_shape=(jax.ShapeDtypeStruct((cp, mp), jnp.bfloat16),      # bf16 staging
                   jax.ShapeDtypeStruct((nt, cp, LANES), jnp.float32),
                   jax.ShapeDtypeStruct((nt, cp, LANES), jnp.float32)),
        grid=(nt,),
        in_specs=[
            pl.BlockSpec((k, tm), lambda i: (0, i)),     # patches^T tile (bf16)
            pl.BlockSpec((cp, k), lambda i: (0, 0)),     # weights (resident, bf16)
        ],
        out_specs=(
            pl.BlockSpec((cp, tm), lambda i: (0, i)),            # conv output y (lane-dense)
            pl.BlockSpec((None, cp, LANES), lambda i: (i, 0, 0)),  # per-tile partial sum
            pl.BlockSpec((None, cp, LANES), lambda i: (i, 0, 0)),  # per-tile partial sumsq
        ),
        compiler_params=pltpu.CompilerParams(
            dimension_semantics=("parallel",)),          # no serialization -> megacore OK
    )(pT_b, wT_b)

    # Fold the tiny (nt, cp, 128) partials into folded per-channel BN scale/shift (plain JAX).
    s = jnp.sum(psum, axis=(0, 2))                       # (cp,)
    q = jnp.sum(psq, axis=(0, 2))                        # (cp,)
    inv_m = 1.0 / m
    mean = s * inv_m
    var = jnp.maximum(q * inv_m - mean * mean, 0.0)
    g_p = jnp.pad(gamma.astype(jnp.float32), (0, cp - cout))
    b_p = jnp.pad(beta.astype(jnp.float32), (0, cp - cout))
    scale = g_p * jax.lax.rsqrt(var + EPS)               # gamma * rsqrt folded once
    shift = b_p - scale * mean
    scale = scale.reshape(cp, 1)
    shift = shift.reshape(cp, 1)

    out_cm = pl.pallas_call(
        bn_relu_kernel,
        out_shape=jax.ShapeDtypeStruct((cp, mp), jnp.float32),
        grid=(nt,),
        in_specs=[
            pl.BlockSpec((cp, tm), lambda i: (0, i)),    # bf16 staging y
            pl.BlockSpec((cp, 1), lambda i: (0, 0)),
            pl.BlockSpec((cp, 1), lambda i: (0, 0)),
        ],
        out_specs=pl.BlockSpec((cp, tm), lambda i: (0, i)),
        compiler_params=pltpu.CompilerParams(
            dimension_semantics=("parallel",)),          # fully parallel (megacore on v7x)
    )(y, scale, shift)

    # (Cout_p, Mp) channel-major -> slice real channels/rows -> NCHW (kept in wrapper: an
    # in-kernel NCHW store would be sub-128-lane masked vst.msk with Wo=8).
    out = out_cm[:cout, :m].reshape(cout, n, ho, wo)
    return out.transpose(1, 0, 2, 3)


def conv_block_reference(x, weight, bias, gamma, beta):
    # Pure-JAX reference matching the PyTorch module (training-mode BatchNorm).
    y = jax.lax.conv_general_dilated(
        x, weight, window_strides=(2, 2), padding=((1, 1), (1, 1)),
        dimension_numbers=("NCHW", "OIHW", "NCHW"),
        precision=jax.lax.Precision.HIGHEST)
    y = y + bias[None, :, None, None]
    mean = jnp.mean(y, axis=(0, 2, 3), keepdims=True)
    var = jnp.mean((y - mean) ** 2, axis=(0, 2, 3), keepdims=True)
    y_hat = (y - mean) / jnp.sqrt(var + EPS)
    out = gamma[None, :, None, None] * y_hat + beta[None, :, None, None]
    return jnp.maximum(out, 0.0)


if __name__ == "__main__":
    key = jax.random.PRNGKey(0)
    k_x, k_w, k_b, k_g, k_be = jax.random.split(key, 5)

    # Small shapes consistent with ConvBlock(input_size=4, output_size=8)
    N, Cin, H, W = 2, 4, 16, 16
    Cout, K = 8, 4

    x = jax.random.normal(k_x, (N, Cin, H, W), jnp.float32)
    weight = jax.random.normal(k_w, (Cout, Cin, K, K), jnp.float32) * 0.1
    bias = jax.random.normal(k_b, (Cout,), jnp.float32) * 0.1
    gamma = 1.0 + 0.1 * jax.random.normal(k_g, (Cout,), jnp.float32)
    beta = 0.1 * jax.random.normal(k_be, (Cout,), jnp.float32)

    out = conv_block(x, weight, bias, gamma, beta)
    out = jax.block_until_ready(out)

    ref = conv_block_reference(x, weight, bias, gamma, beta)
    assert out.shape == (N, Cout, H // 2, W // 2), out.shape
    # bf16 MXU operands + bf16 staging of y => slightly looser tolerance than pure-f32.
    assert jnp.allclose(out, ref, atol=3e-2, rtol=3e-2), "mismatch vs reference"

    print("KERNEL_OK")
</pallas_src>

<mosaic_0001>
module attributes {stable_mosaic.version = 11 : i64} {
  func.func @conv_stats_kernel(%arg0: i32, %arg1: memref<64x128xbf16, #tpu.memory_space<vmem>>, %arg2: memref<16x64xbf16, #tpu.memory_space<vmem>>, %arg3: memref<16x128xbf16, #tpu.memory_space<vmem>>, %arg4: memref<1x16x128xf32, #tpu.memory_space<vmem>>, %arg5: memref<1x16x128xf32, #tpu.memory_space<vmem>>) attributes {dimension_semantics = [#tpu.dimension_semantics<parallel>], iteration_bounds = array<i64: 1>, scalar_prefetch = 0 : i64, scratch_operands = 0 : i64, tpu.core_type = #tpu.core_type<tc>, window_params = [{transform_indices = @transform_0, window_bounds = array<i64: 64, 128>}, {pipeline_mode = #tpu.pipeline_mode<synchronous>, transform_indices = @transform_1, window_bounds = array<i64: 16, 64>}, {transform_indices = @transform_2, window_bounds = array<i64: 16, 128>}, {transform_indices = @transform_3, window_bounds = array<i64: 1, 16, 128>}, {transform_indices = @transform_4, window_bounds = array<i64: 1, 16, 128>}]} {
    %c0 = arith.constant 0 : index
    %c0_0 = arith.constant 0 : index
    %0 = vector.load %arg2[%c0, %c0_0] : memref<16x64xbf16, #tpu.memory_space<vmem>>, vector<16x64xbf16>
    %c0_1 = arith.constant 0 : index
    %c0_2 = arith.constant 0 : index
    %1 = vector.load %arg1[%c0_1, %c0_2] : memref<64x128xbf16, #tpu.memory_space<vmem>>, vector<64x128xbf16>
    %cst = arith.constant dense<0.000000e+00> : vector<16x128xf32>
    %2 = tpu.matmul %0, %1, %cst {dimension_numbers = #tpu.dot_dimension_numbers<[1], [0], [0], [1], [0, 0, 1, 1], [], []>} : vector<16x64xbf16>, vector<64x128xbf16>, vector<16x128xf32> -> vector<16x128xf32>
    %3 = arith.truncf %2 : vector<16x128xf32> to vector<16x128xbf16>
    %c0_3 = arith.constant 0 : index
    %c0_4 = arith.constant 0 : index
    %4 = vector.load %arg3[%c0_3, %c0_4] : memref<16x128xbf16, #tpu.memory_space<vmem>>, vector<16x128xbf16>
    tpu.vector_store %arg3[%c0_3, %c0_4], %3 {strides = array<i32>} : memref<16x128xbf16, #tpu.memory_space<vmem>>, vector<16x128xbf16>,
    %cst_5 = arith.constant 0.000000e+00 : f32
    %5 = vector.broadcast %cst_5 : f32 to vector<16x128xf32>
    %cst_6 = arith.constant 0.000000e+00 : f32
    %6 = vector.broadcast %cst_6 : f32 to vector<16x128xf32>
    %7 = arith.addf %5, %2 : vector<16x128xf32>
    %8 = arith.mulf %2, %2 : vector<16x128xf32>
    %9 = arith.addf %6, %8 : vector<16x128xf32>
    %c0_7 = arith.constant 0 : index
    %c0_8 = arith.constant 0 : index
    %c0_9 = arith.constant 0 : index
    %10 = vector.load %arg4[%c0_7, %c0_8, %c0_9] : memref<1x16x128xf32, #tpu.memory_space<vmem>>, vector<1x16x128xf32>
    %11 = vector.shape_cast %10 : vector<1x16x128xf32> to vector<16x128xf32>
    %12 = vector.shape_cast %7 : vector<16x128xf32> to vector<1x16x128xf32>
    tpu.vector_store %arg4[%c0_7, %c0_8, %c0_9], %12 {strides = array<i32>} : memref<1x16x128xf32, #tpu.memory_space<vmem>>, vector<1x16x128xf32>,
    %c0_10 = arith.constant 0 : index
    %c0_11 = arith.constant 0 : index
    %c0_12 = arith.constant 0 : index
    %13 = vector.load %arg5[%c0_10, %c0_11, %c0_12] : memref<1x16x128xf32, #tpu.memory_space<vmem>>, vector<1x16x128xf32>
    %14 = vector.shape_cast %13 : vector<1x16x128xf32> to vector<16x128xf32>
    %15 = vector.shape_cast %9 : vector<16x128xf32> to vector<1x16x128xf32>
    tpu.vector_store %arg5[%c0_10, %c0_11, %c0_12], %15 {strides = array<i32>} : memref<1x16x128xf32, #tpu.memory_space<vmem>>, vector<1x16x128xf32>,
    return
  }
  func.func @transform_0(%arg0: i32) -> (i32, i32) {
    %c0_i32 = arith.constant 0 : i32
    %c0_i32_0 = arith.constant 0 : i32
    return %c0_i32, %arg0 : i32, i32
  }
  func.func @transform_1(%arg0: i32) -> (i32, i32) {
    %c0_i32 = arith.constant 0 : i32
    %c0_i32_0 = arith.constant 0 : i32
    %c0_i32_1 = arith.constant 0 : i32
    return %c0_i32, %c0_i32_0 : i32, i32
  }
  func.func @transform_2(%arg0: i32) -> (i32, i32) {
    %c0_i32 = arith.constant 0 : i32
    %c0_i32_0 = arith.constant 0 : i32
    return %c0_i32, %arg0 : i32, i32
  }
  func.func @transform_3(%arg0: i32) -> (i32, i32, i32) {
    %c0_i32 = arith.constant 0 : i32
    %c0_i32_0 = arith.constant 0 : i32
    %c0_i32_1 = arith.constant 0 : i32
    return %arg0, %c0_i32, %c0_i32_0 : i32, i32, i32
  }
  func.func @transform_4(%arg0: i32) -> (i32, i32, i32) {
    %c0_i32 = arith.constant 0 : i32
    %c0_i32_0 = arith.constant 0 : i32
    %c0_i32_1 = arith.constant 0 : i32
    return %arg0, %c0_i32, %c0_i32_0 : i32, i32, i32
  }
}

</mosaic_0001>

<bundles_post_ra>
// kernel: tpu_custom_call.1
= control target key start
LH: loop header
LB: loop body
LE: loop exit
PB: predicated region body
PF: predicated region fallthrough
CT: control target
= control target key end

     0   :  { %10 = vsyncpa [#allocation3], 0  ;;  %s421_s0 = inlined_call_operand.hbm [shape: bf16[64,128], index: 0, kind: input, shape index: {}]   ;;  %s422_s1 = inlined_call_operand.hbm [shape: bf16[16,64], index: 1, kind: input, shape index: {}]   ;;  %s423_s2 = inlined_call_operand.hbm [shape: bf16[16,128], index: 2, kind: output, shape index: {0}]   ;;  %s424_s3 = inlined_call_operand.hbm [shape: f32[1,16,128], index: 3, kind: output, shape index: {1}]   ;;  %s425_s4 = inlined_call_operand.hbm [shape: f32[1,16,128], index: 4, kind: output, shape index: {2}]  }
   0x1   :  { %11 = vsyncpa [#allocation6], 0 }
   0x2   :  { %12 = vsyncpa [#allocation4], 0 }
   0x3   :  { %13 = vsyncpa [#allocation9], 0  ;;  %s354_s15 = smov [#allocation2]  }
   0x4   :  { %s19_s16 = sshll.u32 %s354_s15, 4  ;;  %s20_s16 = int_to_ptr.vmem [resolvable:$true] %s19_s16 }
   0x5   :  { %s254_s17 = scalar_lea.vmem %s20_s16, 512  ;;  %p259_p1 = scmp.lt.s32.totalorder %s20_s16, %s20_s16 }
   0x6   :  { %p255_p0 = scmp.ne.s32.totalorder %s20_s16, %s254_s17  ;;  %p260_p2 = scmp.lt.s32.totalorder %s254_s17, %s254_s17 }
   0x8   :  { %p261_p3 = por %p260_p2, %p259_p1 }
   0xa   :  { %p262_p4 = pnand %p261_p3, %p255_p0 }
   0xc   :  { %265 = shalt.err (!%p262_p4)
}
   0xd   :  { %s355_s18 = smov 64   ;;  %s356_s19 = smov 4  }
   0xe   :  { %25 = dma.hbm_to_vmem [thread:$0]  %s421_s0, 512, %s20_s16, [#allocation3], %s355_s18, %s355_s18, %s356_s19  }
   0xf   :  { %s357_s22 = smov [#allocation5]  }
  0x10   :  { %s31_s23 = sshll.u32 %s357_s22, 4  ;;  %s32_s23 = int_to_ptr.vmem [resolvable:$true] %s31_s23 }
  0x11   :  { %s274_s24 = scalar_lea.vmem %s32_s23, 128  ;;  %p279_p6 = scmp.lt.s32.totalorder %s32_s23, %s32_s23 }
  0x12   :  { %p275_p5 = scmp.ne.s32.totalorder %s32_s23, %s274_s24  ;;  %p280_p7 = scmp.lt.s32.totalorder %s274_s24, %s274_s24 }
  0x14   :  { %p281_p8 = por %p280_p7, %p279_p6 }
  0x16   :  { %p282_p9 = pnand %p281_p8, %p275_p5 }
  0x18   :  { %285 = shalt.err (!%p282_p9)
}
  0x19   :  { %37 = dma.hbm_to_vmem [thread:$0]  %s422_s1, 128, %s32_s23, [#allocation6], %s355_s18, %s355_s18, %s356_s19  }
  0x1a   :  { %346 = dma.done.wait [#allocation3], 512  }
  0x1b   :  { %347 = vsyncadd [#allocation3], 4294966784 }
  0x1c   :  { %348 = dma.done.wait [#allocation6], 128  }
  0x1d   :  { %349 = vsyncadd [#allocation6], 4294967168  ;;  %v358_v0 = vmov 0.0   ;;  %vm359_vm0 = vmmov 0   ;;  %v241_v1 = vld [vmem:[#allocation2 + $0x18] sm:$0xff]   ;;  %v242_v2 = vld [vmem:[#allocation2 + $0x10] sm:$0xff]  }
  0x1e   :  { %218 = vmatprep.subr.bf16.mxu0 %v358_v0  ;;  %226 = vmatprep.mubr.msk.bf16.mxu0 %vm359_vm0, %v358_v0  ;;  %v243_v3 = vld [vmem:[#allocation2 + $0x8] sm:$0xff]   ;;  %v244_v4 = vld [vmem:[#allocation2] sm:$0xff]   ;;  %vm84_vm1 = vcmask 523264   ;;  %s360_s0 = smov [#allocation8]   ;;  %s361_s27 = smov [#allocation7]  }
  0x1f   :  { %219 = vmatpush3.bf16.msra.mxu0 %v241_v1  ;;  %v245_v5 = vld [vmem:[#allocation5] sm:$0xff]   ;;  %s166_s1 = sshll.u32 %s360_s0, 4  ;;  %s154_s28 = sshll.u32 %s361_s27, 4  ;;  %s167_s1 = int_to_ptr.vmem [resolvable:$true] %s166_s1  ;;  %s155_s28 = int_to_ptr.vmem [resolvable:$true] %s154_s28 }
  0x20   :  { %220 = vmatprep.subr.bf16.mxu0 %v358_v0  ;;  %s362_s29 = smov [#allocation10]   ;;  %s286_s5 = scalar_lea.vmem %s167_s1, 256 }
  0x21   :  { %s178_s30 = sshll.u32 %s362_s29, 4  ;;  %p287_p10 = scmp.ne.s32.totalorder %s167_s1, %s286_s5  ;;  %s402_s30 = int_to_ptr.vmem [resolvable:$true] %s178_s30 }
  0x22   :  { %p291_p11 = scmp.lt.s32.totalorder %s167_s1, %s167_s1  ;;  %p292_p12 = scmp.lt.s32.totalorder %s286_s5, %s286_s5 }
  0x23   :  { %221 = vmatpush3.bf16.msra.mxu0 %v242_v2 }
  0x24   :  { %222 = vmatprep.subr.bf16.mxu0 %v358_v0  ;;  %p293_p13 = por %p292_p12, %p291_p11 }
  0x26   :  { %p294_p0 = pnand %p293_p13, %p287_p10 }
  0x27   :  { %223 = vmatpush3.bf16.msra.mxu0 %v243_v3 }
  0x28   :  { %224 = vmatprep.subr.bf16.mxu0 %v358_v0 }
  0x2b   :  { %225 = vmatpush3.bf16.msra.mxu0 %v244_v4 }
  0x2e   :  { %227 = vmatmul.mubr.msk.bf16.vlgmr.msra.gmra.mxu0 %vm84_vm1, %v245_v5 }
  0xee   :  { %v122_v6 = vpop.f32.mrf.mxu0 }
  0xef   :  { %v141_v7 = vmul.f32 %v122_v6, %v122_v6  ;;  %145 = vst [vmem:[#allocation8] sm:$0xff] %v122_v6 }
  0xf0   :  { %v228_v8 = vpop.f32.mrf.mxu0 }
  0xf1   :  { %147 = vst [vmem:[#allocation10] sm:$0xff] %v141_v7 }
  0xf2   :  { %v125_v9 = vpop.f32.mrf.mxu0 }
  0xf3   :  { %v211_v10 = vpack.c.bf16 %v125_v9, %v122_v6  ;;  %v142_v11 = vmul.f32 %v125_v9, %v125_v9  ;;  %146 = vst [vmem:[#allocation8 + $0x8] sm:$0xff] %v125_v9 }
  0xf4   :  { %v229_v12 = vpop.f32.mrf.mxu0 }
  0xf5   :  { %297 = shalt.err (!%p294_p0)
}
  0xf6   :  { %s363_s6 = smov 128   ;;  %s364_s7 = smov 8   ;;  %148 = vst [vmem:[#allocation10 + $0x8] sm:$0xff] %v142_v11  ;;  %212 = vst [vmem:[#allocation7] sm:$0xff] %v211_v10  }
  0xf7   :  { %172 = dma.vmem_to_hbm [thread:$0]  %s167_s1, 256, %s424_s3, [#allocation9], %s363_s6, %s363_s6, %s364_s7  }
  0xf8   :  { %s306_s10 = scalar_lea.vmem %s155_s28, 128  ;;  %p311_p2 = scmp.lt.s32.totalorder %s155_s28, %s155_s28 }
  0xf9   :  { %p307_p1 = scmp.ne.s32.totalorder %s155_s28, %s306_s10  ;;  %p312_p3 = scmp.lt.s32.totalorder %s306_s10, %s306_s10 }
  0xfb   :  { %p313_p4 = por %p312_p3, %p311_p2 }
  0xfd   :  { %p314_p5 = pnand %p313_p4, %p307_p1 }
  0xff   :  { %317 = shalt.err (!%p314_p5)
}
 0x100   :  { %160 = dma.vmem_to_hbm [thread:$0]  %s155_s28, 128, %s423_s2, [#allocation4], %s355_s18, %s355_s18, %s356_s19  }
 0x101   :  { %s326_s3 = scalar_lea.vmem %s402_s30, 256  ;;  %p331_p7 = scmp.lt.s32.totalorder %s402_s30, %s402_s30 }
 0x102   :  { %p327_p6 = scmp.ne.s32.totalorder %s402_s30, %s326_s3  ;;  %p332_p8 = scmp.lt.s32.totalorder %s326_s3, %s326_s3 }
 0x104   :  { %p333_p9 = por %p332_p8, %p331_p7 }
 0x106   :  { %p334_p10 = pnand %p333_p9, %p327_p6 }
 0x108   :  { %337 = shalt.err (!%p334_p10)
}
 0x109   :  { %184 = dma.vmem_to_hbm [thread:$0]  %s402_s30, 256, %s425_s4, [#allocation9], %s363_s6, %s363_s6, %s364_s7  }
 0x10a   :  { %350 = dma.done.wait [#allocation4], 128  }
 0x10b   :  { %351 = vsyncadd [#allocation4], 4294967168 }
 0x10c   :  { %352 = dma.done.wait [#allocation9], 512  }
 0x10d   :  { %353 = vsyncadd [#allocation9], 4294966784 }
 0x10e   :  { %194 = vsyncpa [#allocation3], 1 }
 0x10f   :  { %195 = vsyncpa [#allocation6], 1 }
 0x110   :  { %196 = vsyncpa [#allocation4], 1 }
 0x111   :  { %197 = vsyncpa [#allocation9], 1 }

</bundles_post_ra>
